<compile_context>
chip_gen: v6e
topology: v6e:2x2x1
jax: 0.10.0
libtpu: 0.0.40
codegen_flags: <defaults>
</compile_context>

<pallas_src>
import jax
import jax.numpy as jnp
from jax import lax
from jax.experimental import pallas as pl
from jax.experimental.pallas import tpu as pltpu

# ----------------------------- model config ---------------------------------
B            = 2            # batch
SEQ_LEN      = 8            # args.seq_len
DW           = 16           # args.dw            (word embedding dim)
DIM_POSIDX   = 4            # args.dim_posidx    (position embedding dim)
C_IN         = DW + 2 * DIM_POSIDX            # conv input channels = 24
DIM_CONV     = 32           # args.dim_conv
KERNEL_SIZES = (3, 5)       # args.kernel_sizes
VAC_LEN_WORD = 50           # args.vac_len_word
VAC_LEN_POS  = 20           # args.vac_len_pos
VAC_LEN_REL  = 8            # args.vac_len_rel   (output classes)
K_MAX        = max(KERNEL_SIZES)                  # 5
PAD_MAX      = max(k // 2 for k in KERNEL_SIZES)  # 2
N_CONV_OUT   = DIM_CONV * len(KERNEL_SIZES)       # 64  ([conv3 | conv5])
FC_IN        = 2 * DW + N_CONV_OUT                # 96  ([e1 | e2 | conv3 | conv5])

VOC_PAD      = 128          # padded row count of the combined gather table (lane dense)
K_PAD        = 128          # padded contraction dim of the merged conv matmul (120 -> 128)


# ------------------------------- kernel -------------------------------------
def cnn_kernel(idx_seq_ref,   # (BB*SEQ_LEN, 3) int32  [word_idx | pos1_idx | pos2_idx]
               idx_ent_ref,   # (BB, 2)        int32  [e1_idx | e2_idx]
               table_ref,     # (VOC_PAD, C_IN)        block-diag [word|pos1|pos2] table
               convw_ref,     # (K_PAD, N_CONV_OUT)    merged conv3|conv5 weight (K padded)
               convb_ref,     # (1, N_CONV_OUT)
               fcwe_ref,      # (2*VOC_PAD, R)         entity-gather folded FC weight
               fcwc_ref,      # (N_CONV_OUT, R)        conv part of FC weight
               fcb_ref,       # (1, R)
               out_ref):      # (BB, R)
    rows = idx_seq_ref.shape[0]      # BB * SEQ_LEN
    bb   = out_ref.shape[0]          # batch block

    # ---- fused embedding gather (word | pos1 | pos2) as ONE one-hot MXU push ----
    w_col  = idx_seq_ref[:, 0:1]
    p1_col = idx_seq_ref[:, 1:2] + VAC_LEN_WORD
    p2_col = idx_seq_ref[:, 2:3] + VAC_LEN_WORD + VAC_LEN_POS
    vocab_iota = lax.broadcasted_iota(jnp.int32, (rows, VOC_PAD), 1)
    seq_oh = ((vocab_iota == w_col) | (vocab_iota == p1_col) |
              (vocab_iota == p2_col)).astype(jnp.float32)           # (rows, 128)
    wa = jnp.dot(seq_oh, table_ref[...],
                 preferred_element_type=jnp.float32)                # (rows, C_IN)

    # ---- in-kernel im2col: taps via MXU shift matrices (validity mask folded in) ----
    r_i = lax.broadcasted_iota(jnp.int32, (rows, rows), 0)
    c_i = lax.broadcasted_iota(jnp.int32, (rows, rows), 1)
    t_i = r_i % SEQ_LEN                                             # time within sentence
    taps = []
    for k in range(K_MAX):
        d = k - PAD_MAX                                             # tap offset in time
        if d == 0:
            taps.append(wa)
        else:
            # sel[r, s] = 1  iff  s == r + d  and  0 <= t_r + d < SEQ_LEN   (zero-padding)
            sel = ((c_i == r_i + d) & (t_i + d >= 0) &
                   (t_i + d < SEQ_LEN)).astype(jnp.float32)
            taps.append(jnp.dot(sel, wa, preferred_element_type=jnp.float32))
    taps.append(jnp.zeros((rows, K_PAD - K_MAX * C_IN), jnp.float32))   # pad K 120 -> 128
    x = jnp.concatenate(taps, axis=1)                               # (rows, 128)

    # ---- both convolutions in ONE lane-dense MXU push, tanh, MaxPool1d(seq_len) ----
    h = jnp.tanh(jnp.dot(x, convw_ref[...], preferred_element_type=jnp.float32)
                 + convb_ref[...])                                  # (rows, 64) = [c3|c5]
    pooled = jnp.max(h.reshape(bb, SEQ_LEN, N_CONV_OUT), axis=1)    # (bb, 64)

    # ---- FC: entity gather folded into the weight; no in-kernel feature concat ----
    ent_iota = lax.broadcasted_iota(jnp.int32, (bb, 2 * VOC_PAD), 1)
    ent_oh = ((ent_iota == idx_ent_ref[:, 0:1]) |
              (ent_iota == idx_ent_ref[:, 1:2] + VOC_PAD)).astype(jnp.float32)  # (bb, 256)
    logits = (jnp.dot(ent_oh, fcwe_ref[...], preferred_element_type=jnp.float32)
              + jnp.dot(pooled, fcwc_ref[...], preferred_element_type=jnp.float32)
              + fcb_ref[...])                                       # (bb, R)

    # softmax over classes (exact reciprocal for parity with F.softmax)
    m = jnp.max(logits, axis=-1, keepdims=True)
    p = jnp.exp(logits - m)
    out_ref[...] = p * pl.reciprocal(jnp.sum(p, axis=-1, keepdims=True), approx=False)


# --------------------------- one-time param prep -----------------------------
def prepare_params(params):
    """Hoist ALL weight reshapes/merges out of the per-call jitted path."""
    # (1) combined gather table: block-diagonal [word | pos1 | pos2], rows padded to 128.
    table = jnp.zeros((VOC_PAD, C_IN), jnp.float32)
    table = table.at[:VAC_LEN_WORD, :DW].set(params["word"])
    table = table.at[VAC_LEN_WORD:VAC_LEN_WORD + VAC_LEN_POS,
                     DW:DW + DIM_POSIDX].set(params["pos1"])
    table = table.at[VAC_LEN_WORD + VAC_LEN_POS:VAC_LEN_WORD + 2 * VAC_LEN_POS,
                     DW + DIM_POSIDX:C_IN].set(params["pos2"])

    # (2) merged conv3|conv5 weight: k=3 taps zero-padded to 5, contraction 120 -> 128.
    w_stack = jnp.zeros((K_MAX, C_IN, N_CONV_OUT), jnp.float32)
    bias_parts = []
    for idx, K in enumerate(KERNEL_SIZES):
        w = jnp.transpose(params[f"conv{K}_w"], (2, 1, 0))          # (K, C_IN, DIM_CONV)
        off = PAD_MAX - K // 2                                      # tap offset in im2col
        w_stack = w_stack.at[off:off + K, :,
                             idx * DIM_CONV:(idx + 1) * DIM_CONV].set(w)
        bias_parts.append(params[f"conv{K}_b"])
    conv_w = jnp.zeros((K_PAD, N_CONV_OUT), jnp.float32)
    conv_w = conv_w.at[:K_MAX * C_IN, :].set(w_stack.reshape(K_MAX * C_IN, N_CONV_OUT))
    conv_b = jnp.concatenate(bias_parts).reshape(1, N_CONV_OUT)

    # (3) FC split [e1 | e2 | conv]; fold the entity word-embedding gather into the
    #     FC weight: word[e] @ fcw_e == onehot(e) @ (word_table @ fcw_e).
    fc_w = params["fc_w"]                                           # (R, FC_IN)
    fcw_e1 = fc_w[:, :DW].T                                         # (DW, R)
    fcw_e2 = fc_w[:, DW:2 * DW].T                                   # (DW, R)
    fcw_conv = fc_w[:, 2 * DW:].T                                   # (N_CONV_OUT, R)

    def fold(we):
        return jnp.zeros((VOC_PAD, VAC_LEN_REL), jnp.float32
                         ).at[:VAC_LEN_WORD].set(params["word"] @ we)
    fcw_ent = jnp.concatenate([fold(fcw_e1), fold(fcw_e2)], axis=0)  # (2*VOC_PAD, R)

    return {"table": table, "conv_w": conv_w, "conv_b": conv_b,
            "fcw_ent": fcw_ent, "fcw_conv": fcw_conv,
            "fc_b": params["fc_b"].reshape(1, VAC_LEN_REL)}


# ------------------------------- wrapper -------------------------------------
def cnn_forward(prepped, W, W_pos1, W_pos2, e1, e2):
    Bsz = W.shape[0]
    # Batch block: one grid step per BB sentences; all weights use constant
    # index_maps so they stay VMEM-resident across steps.  For large batches
    # choose BB=16 (v5e, M=128 per MXU push) or BB=32 with bf16 MXU operands
    # (v6e / v7x, M=256); ("parallel",) lets v7x shard the grid over its 2 TCs.
    BB = 16 if Bsz % 16 == 0 else Bsz
    grid = (Bsz // BB,)
    rows_blk = BB * SEQ_LEN

    # Only out-of-kernel work: pack the raw int32 indices (a few hundred bytes)
    # into two column matrices.  Gathers / padding / im2col / conv / pool / fc /
    # softmax all run inside the single Pallas call below.
    idx_seq = jnp.stack([W.reshape(-1), W_pos1.reshape(-1), W_pos2.reshape(-1)],
                        axis=1).astype(jnp.int32)                   # (B*L, 3)
    idx_ent = jnp.stack([e1, e2], axis=1).astype(jnp.int32)         # (B, 2)

    return pl.pallas_call(
        cnn_kernel,
        out_shape=jax.ShapeDtypeStruct((Bsz, VAC_LEN_REL), jnp.float32),
        grid=grid,
        in_specs=[
            pl.BlockSpec((rows_blk, 3), lambda i: (i, 0)),                 # idx_seq
            pl.BlockSpec((BB, 2), lambda i: (i, 0)),                       # idx_ent
            pl.BlockSpec((VOC_PAD, C_IN), lambda i: (0, 0)),               # gather table
            pl.BlockSpec((K_PAD, N_CONV_OUT), lambda i: (0, 0)),           # conv weight
            pl.BlockSpec((1, N_CONV_OUT), lambda i: (0, 0)),               # conv bias
            pl.BlockSpec((2 * VOC_PAD, VAC_LEN_REL), lambda i: (0, 0)),    # fc (entities)
            pl.BlockSpec((N_CONV_OUT, VAC_LEN_REL), lambda i: (0, 0)),     # fc (conv)
            pl.BlockSpec((1, VAC_LEN_REL), lambda i: (0, 0)),              # fc bias
        ],
        out_specs=pl.BlockSpec((BB, VAC_LEN_REL), lambda i: (i, 0)),
        compiler_params=pltpu.CompilerParams(
            dimension_semantics=("parallel",)),
    )(idx_seq, idx_ent, prepped["table"], prepped["conv_w"], prepped["conv_b"],
      prepped["fcw_ent"], prepped["fcw_conv"], prepped["fc_b"])


# --------------------------- pure-JAX reference ------------------------------
def reference_forward(params, W, W_pos1, W_pos2, e1, e2):
    We = params["word"][W]
    P1 = params["pos1"][W_pos1]
    P2 = params["pos2"][W_pos2]
    Wa = jnp.concatenate([We, P1, P2], axis=2)                      # (B, L, C_IN)
    feats = []
    for K in KERNEL_SIZES:
        w, b = params[f"conv{K}_w"], params[f"conv{K}_b"]           # (O, C, K), (O,)
        pad = K // 2
        Wp = jnp.pad(Wa, ((0, 0), (pad, pad), (0, 0)))
        cols = jnp.stack([Wp[:, j:j + SEQ_LEN, :] for j in range(K)], axis=3)  # (B,L,C,K)
        conv = jnp.tanh(jnp.einsum("blck,ock->blo", cols, w) + b)
        feats.append(jnp.max(conv, axis=1))                         # (B, DIM_CONV)
    e_concat = jnp.concatenate([params["word"][e1], params["word"][e2]], axis=1)
    allc = jnp.concatenate([e_concat] + feats, axis=1)              # (B, FC_IN)
    logits = allc @ params["fc_w"].T + params["fc_b"]
    return jax.nn.softmax(logits, axis=1)


# ------------------------------ param init ----------------------------------
def init_params(key):
    ks = jax.random.split(key, 8)
    scale = 0.1
    return {
        "word":    scale * jax.random.normal(ks[0], (VAC_LEN_WORD, DW), jnp.float32),
        "pos1":    scale * jax.random.normal(ks[1], (VAC_LEN_POS, DIM_POSIDX), jnp.float32),
        "pos2":    scale * jax.random.normal(ks[2], (VAC_LEN_POS, DIM_POSIDX), jnp.float32),
        "conv3_w": scale * jax.random.normal(ks[3], (DIM_CONV, C_IN, KERNEL_SIZES[0]), jnp.float32),
        "conv3_b": scale * jax.random.normal(ks[4], (DIM_CONV,), jnp.float32),
        "conv5_w": scale * jax.random.normal(ks[5], (DIM_CONV, C_IN, KERNEL_SIZES[1]), jnp.float32),
        "conv5_b": scale * jax.random.normal(ks[6], (DIM_CONV,), jnp.float32),
        "fc_w":    scale * jax.random.normal(ks[7], (VAC_LEN_REL, FC_IN), jnp.float32),
        "fc_b":    jnp.zeros((VAC_LEN_REL,), jnp.float32),
    }


if __name__ == "__main__":
    key = jax.random.PRNGKey(0)
    pkey, k1, k2, k3, k4, k5 = jax.random.split(key, 6)
    params = init_params(pkey)
    prepped = prepare_params(params)   # one-time weight prep, outside the jitted forward

    W      = jax.random.randint(k1, (B, SEQ_LEN), 0, VAC_LEN_WORD, jnp.int32)
    W_pos1 = jax.random.randint(k2, (B, SEQ_LEN), 0, VAC_LEN_POS,  jnp.int32)
    W_pos2 = jax.random.randint(k3, (B, SEQ_LEN), 0, VAC_LEN_POS,  jnp.int32)
    e1     = jax.random.randint(k4, (B,), 0, VAC_LEN_WORD, jnp.int32)
    e2     = jax.random.randint(k5, (B,), 0, VAC_LEN_WORD, jnp.int32)

    out = jax.jit(cnn_forward)(prepped, W, W_pos1, W_pos2, e1, e2)
    out = jax.block_until_ready(out)
    assert out.shape == (B, VAC_LEN_REL)
    assert bool(jnp.all(jnp.isfinite(out)))
    assert bool(jnp.all(jnp.abs(jnp.sum(out, axis=-1) - 1.0) < 1e-3))

    ref = reference_forward(params, W, W_pos1, W_pos2, e1, e2)
    assert bool(jnp.max(jnp.abs(out - ref)) < 2e-2), "mismatch vs pure-JAX reference"

    print("KERNEL_OK")
</pallas_src>

<mosaic_0001>
module attributes {stable_mosaic.version = 11 : i64} {
  func.func @cnn_kernel(%arg0: i32, %arg1: memref<16x3xi32, #tpu.memory_space<vmem>>, %arg2: memref<2x2xi32, #tpu.memory_space<vmem>>, %arg3: memref<128x24xf32, #tpu.memory_space<vmem>>, %arg4: memref<128x64xf32, #tpu.memory_space<vmem>>, %arg5: memref<1x64xf32, #tpu.memory_space<vmem>>, %arg6: memref<256x8xf32, #tpu.memory_space<vmem>>, %arg7: memref<64x8xf32, #tpu.memory_space<vmem>>, %arg8: memref<1x8xf32, #tpu.memory_space<vmem>>, %arg9: memref<2x8xf32, #tpu.memory_space<vmem>>) attributes {dimension_semantics = [#tpu.dimension_semantics<parallel>], iteration_bounds = array<i64: 1>, scalar_prefetch = 0 : i64, scratch_operands = 0 : i64, tpu.core_type = #tpu.core_type<tc>, window_params = [{transform_indices = @transform_0, window_bounds = array<i64: 16, 3>}, {transform_indices = @transform_1, window_bounds = array<i64: 2, 2>}, {pipeline_mode = #tpu.pipeline_mode<synchronous>, transform_indices = @transform_2, window_bounds = array<i64: 128, 24>}, {pipeline_mode = #tpu.pipeline_mode<synchronous>, transform_indices = @transform_3, window_bounds = array<i64: 128, 64>}, {pipeline_mode = #tpu.pipeline_mode<synchronous>, transform_indices = @transform_4, window_bounds = array<i64: 1, 64>}, {pipeline_mode = #tpu.pipeline_mode<synchronous>, transform_indices = @transform_5, window_bounds = array<i64: 256, 8>}, {pipeline_mode = #tpu.pipeline_mode<synchronous>, transform_indices = @transform_6, window_bounds = array<i64: 64, 8>}, {pipeline_mode = #tpu.pipeline_mode<synchronous>, transform_indices = @transform_7, window_bounds = array<i64: 1, 8>}, {transform_indices = @transform_8, window_bounds = array<i64: 2, 8>}]} {
    %c0 = arith.constant 0 : index
    %c0_0 = arith.constant 0 : index
    %0 = vector.load %arg1[%c0, %c0_0] : memref<16x3xi32, #tpu.memory_space<vmem>>, vector<16x1xi32>
    %c0_1 = arith.constant 0 : index
    %c1 = arith.constant 1 : index
    %1 = vector.load %arg1[%c0_1, %c1] : memref<16x3xi32, #tpu.memory_space<vmem>>, vector<16x1xi32>
    %c50_i32 = arith.constant 50 : i32
    %2 = vector.broadcast %c50_i32 : i32 to vector<16x1xi32>
    %3 = arith.addi %1, %2 : vector<16x1xi32>
    %c0_2 = arith.constant 0 : index
    %c2 = arith.constant 2 : index
    %4 = vector.load %arg1[%c0_2, %c2] : memref<16x3xi32, #tpu.memory_space<vmem>>, vector<16x1xi32>
    %c50_i32_3 = arith.constant 50 : i32
    %5 = vector.broadcast %c50_i32_3 : i32 to vector<16x1xi32>
    %6 = arith.addi %4, %5 : vector<16x1xi32>
    %c20_i32 = arith.constant 20 : i32
    %7 = vector.broadcast %c20_i32 : i32 to vector<16x1xi32>
    %8 = arith.addi %6, %7 : vector<16x1xi32>
    %9 = tpu.iota {dimensions = array<i32: 1>} : vector<16x128xi32>
    %10 = vector.broadcast %0 : vector<16x1xi32> to vector<16x128xi32>
    %11 = arith.cmpi eq, %9, %10 : vector<16x128xi32>
    %12 = vector.broadcast %3 : vector<16x1xi32> to vector<16x128xi32>
    %13 = arith.cmpi eq, %9, %12 : vector<16x128xi32>
    %14 = arith.ori %11, %13 : vector<16x128xi1>
    %15 = vector.broadcast %8 : vector<16x1xi32> to vector<16x128xi32>
    %16 = arith.cmpi eq, %9, %15 : vector<16x128xi32>
    %17 = arith.ori %14, %16 : vector<16x128xi1>
    %18 = arith.extui %17 : vector<16x128xi1> to vector<16x128xi32>
    %19 = arith.sitofp %18 : vector<16x128xi32> to vector<16x128xf32>
    %c0_4 = arith.constant 0 : index
    %c0_5 = arith.constant 0 : index
    %20 = vector.load %arg3[%c0_4, %c0_5] : memref<128x24xf32, #tpu.memory_space<vmem>>, vector<128x24xf32>
    %cst = arith.constant dense<0.000000e+00> : vector<16x24xf32>
    %21 = tpu.matmul %19, %20, %cst {dimension_numbers = #tpu.dot_dimension_numbers<[1], [0], [0], [1], [0, 0, 1, 1], [], []>} : vector<16x128xf32>, vector<128x24xf32>, vector<16x24xf32> -> vector<16x24xf32>
    %22 = tpu.iota {dimensions = array<i32: 0>} : vector<16x16xi32>
    %23 = tpu.iota {dimensions = array<i32: 1>} : vector<16x16xi32>
    %c8_i32 = arith.constant 8 : i32
    %c0_i32 = arith.constant 0 : i32
    %24 = arith.cmpi eq, %c8_i32, %c0_i32 : i32
    %c1_i32 = arith.constant 1 : i32
    %25 = arith.select %24, %c1_i32, %c8_i32 : i32
    %26 = vector.broadcast %25 : i32 to vector<16x16xi32>
    %27 = arith.remsi %22, %26 : vector<16x16xi32>
    %c0_i32_6 = arith.constant 0 : i32
    %28 = vector.broadcast %c0_i32_6 : i32 to vector<16x16xi32>
    %29 = arith.cmpi ne, %27, %28 : vector<16x16xi32>
    %c0_i32_7 = arith.constant 0 : i32
    %30 = vector.broadcast %c0_i32_7 : i32 to vector<16x16xi32>
    %31 = arith.cmpi slt, %27, %30 : vector<16x16xi32>
    %c0_i32_8 = arith.constant 0 : i32
    %32 = arith.cmpi slt, %25, %c0_i32_8 : i32
    %33 = vector.broadcast %32 : i1 to vector<16x16xi1>
    %34 = vector.broadcast %33 : vector<16x16xi1> to vector<16x16xi1>
    %35 = arith.xori %31, %34 : vector<16x16xi1>
    %36 = arith.andi %35, %29 : vector<16x16xi1>
    %37 = vector.broadcast %25 : i32 to vector<16x16xi32>
    %38 = arith.addi %27, %37 : vector<16x16xi32>
    %39 = arith.select %36, %38, %27 : vector<16x16xi1>, vector<16x16xi32>
    %c-2_i32 = arith.constant -2 : i32
    %40 = vector.broadcast %c-2_i32 : i32 to vector<16x16xi32>
    %41 = arith.addi %22, %40 : vector<16x16xi32>
    %42 = arith.cmpi eq, %23, %41 : vector<16x16xi32>
    %c-2_i32_9 = arith.constant -2 : i32
    %43 = vector.broadcast %c-2_i32_9 : i32 to vector<16x16xi32>
    %44 = arith.addi %39, %43 : vector<16x16xi32>
    %c0_i32_10 = arith.constant 0 : i32
    %45 = vector.broadcast %c0_i32_10 : i32 to vector<16x16xi32>
    %46 = arith.cmpi sge, %44, %45 : vector<16x16xi32>
    %47 = arith.andi %42, %46 : vector<16x16xi1>
    %c-2_i32_11 = arith.constant -2 : i32
    %48 = vector.broadcast %c-2_i32_11 : i32 to vector<16x16xi32>
    %49 = arith.addi %39, %48 : vector<16x16xi32>
    %c8_i32_12 = arith.constant 8 : i32
    %50 = vector.broadcast %c8_i32_12 : i32 to vector<16x16xi32>
    %51 = arith.cmpi slt, %49, %50 : vector<16x16xi32>
    %52 = arith.andi %47, %51 : vector<16x16xi1>
    %53 = arith.extui %52 : vector<16x16xi1> to vector<16x16xi32>
    %54 = arith.sitofp %53 : vector<16x16xi32> to vector<16x16xf32>
    %cst_13 = arith.constant dense<0.000000e+00> : vector<16x24xf32>
    %55 = tpu.matmul %54, %21, %cst_13 {dimension_numbers = #tpu.dot_dimension_numbers<[1], [0], [0], [1], [0, 0, 1, 1], [], []>} : vector<16x16xf32>, vector<16x24xf32>, vector<16x24xf32> -> vector<16x24xf32>
    %c-1_i32 = arith.constant -1 : i32
    %56 = vector.broadcast %c-1_i32 : i32 to vector<16x16xi32>
    %57 = arith.addi %22, %56 : vector<16x16xi32>
    %58 = arith.cmpi eq, %23, %57 : vector<16x16xi32>
    %c-1_i32_14 = arith.constant -1 : i32
    %59 = vector.broadcast %c-1_i32_14 : i32 to vector<16x16xi32>
    %60 = arith.addi %39, %59 : vector<16x16xi32>
    %c0_i32_15 = arith.constant 0 : i32
    %61 = vector.broadcast %c0_i32_15 : i32 to vector<16x16xi32>
    %62 = arith.cmpi sge, %60, %61 : vector<16x16xi32>
    %63 = arith.andi %58, %62 : vector<16x16xi1>
    %c-1_i32_16 = arith.constant -1 : i32
    %64 = vector.broadcast %c-1_i32_16 : i32 to vector<16x16xi32>
    %65 = arith.addi %39, %64 : vector<16x16xi32>
    %c8_i32_17 = arith.constant 8 : i32
    %66 = vector.broadcast %c8_i32_17 : i32 to vector<16x16xi32>
    %67 = arith.cmpi slt, %65, %66 : vector<16x16xi32>
    %68 = arith.andi %63, %67 : vector<16x16xi1>
    %69 = arith.extui %68 : vector<16x16xi1> to vector<16x16xi32>
    %70 = arith.sitofp %69 : vector<16x16xi32> to vector<16x16xf32>
    %cst_18 = arith.constant dense<0.000000e+00> : vector<16x24xf32>
    %71 = tpu.matmul %70, %21, %cst_18 {dimension_numbers = #tpu.dot_dimension_numbers<[1], [0], [0], [1], [0, 0, 1, 1], [], []>} : vector<16x16xf32>, vector<16x24xf32>, vector<16x24xf32> -> vector<16x24xf32>
    %c1_i32_19 = arith.constant 1 : i32
    %72 = vector.broadcast %c1_i32_19 : i32 to vector<16x16xi32>
    %73 = arith.addi %22, %72 : vector<16x16xi32>
    %74 = arith.cmpi eq, %23, %73 : vector<16x16xi32>
    %c1_i32_20 = arith.constant 1 : i32
    %75 = vector.broadcast %c1_i32_20 : i32 to vector<16x16xi32>
    %76 = arith.addi %39, %75 : vector<16x16xi32>
    %c0_i32_21 = arith.constant 0 : i32
    %77 = vector.broadcast %c0_i32_21 : i32 to vector<16x16xi32>
    %78 = arith.cmpi sge, %76, %77 : vector<16x16xi32>
    %79 = arith.andi %74, %78 : vector<16x16xi1>
    %c1_i32_22 = arith.constant 1 : i32
    %80 = vector.broadcast %c1_i32_22 : i32 to vector<16x16xi32>
    %81 = arith.addi %39, %80 : vector<16x16xi32>
    %c8_i32_23 = arith.constant 8 : i32
    %82 = vector.broadcast %c8_i32_23 : i32 to vector<16x16xi32>
    %83 = arith.cmpi slt, %81, %82 : vector<16x16xi32>
    %84 = arith.andi %79, %83 : vector<16x16xi1>
    %85 = arith.extui %84 : vector<16x16xi1> to vector<16x16xi32>
    %86 = arith.sitofp %85 : vector<16x16xi32> to vector<16x16xf32>
    %cst_24 = arith.constant dense<0.000000e+00> : vector<16x24xf32>
    %87 = tpu.matmul %86, %21, %cst_24 {dimension_numbers = #tpu.dot_dimension_numbers<[1], [0], [0], [1], [0, 0, 1, 1], [], []>} : vector<16x16xf32>, vector<16x24xf32>, vector<16x24xf32> -> vector<16x24xf32>
    %c2_i32 = arith.constant 2 : i32
    %88 = vector.broadcast %c2_i32 : i32 to vector<16x16xi32>
    %89 = arith.addi %22, %88 : vector<16x16xi32>
    %90 = arith.cmpi eq, %23, %89 : vector<16x16xi32>
    %c2_i32_25 = arith.constant 2 : i32
    %91 = vector.broadcast %c2_i32_25 : i32 to vector<16x16xi32>
    %92 = arith.addi %39, %91 : vector<16x16xi32>
    %c0_i32_26 = arith.constant 0 : i32
    %93 = vector.broadcast %c0_i32_26 : i32 to vector<16x16xi32>
    %94 = arith.cmpi sge, %92, %93 : vector<16x16xi32>
    %95 = arith.andi %90, %94 : vector<16x16xi1>
    %c2_i32_27 = arith.constant 2 : i32
    %96 = vector.broadcast %c2_i32_27 : i32 to vector<16x16xi32>
    %97 = arith.addi %39, %96 : vector<16x16xi32>
    %c8_i32_28 = arith.constant 8 : i32
    %98 = vector.broadcast %c8_i32_28 : i32 to vector<16x16xi32>
    %99 = arith.cmpi slt, %97, %98 : vector<16x16xi32>
    %100 = arith.andi %95, %99 : vector<16x16xi1>
    %101 = arith.extui %100 : vector<16x16xi1> to vector<16x16xi32>
    %102 = arith.sitofp %101 : vector<16x16xi32> to vector<16x16xf32>
    %cst_29 = arith.constant dense<0.000000e+00> : vector<16x24xf32>
    %103 = tpu.matmul %102, %21, %cst_29 {dimension_numbers = #tpu.dot_dimension_numbers<[1], [0], [0], [1], [0, 0, 1, 1], [], []>} : vector<16x16xf32>, vector<16x24xf32>, vector<16x24xf32> -> vector<16x24xf32>
    %cst_30 = arith.constant 0.000000e+00 : f32
    %104 = vector.broadcast %cst_30 : f32 to vector<16x8xf32>
    %105 = tpu.concatenate %55, %71, %21, %87, %103, %104 in 1 : vector<16x24xf32>, vector<16x24xf32>, vector<16x24xf32>, vector<16x24xf32>, vector<16x24xf32>, vector<16x8xf32> -> vector<16x128xf32>
    %c0_31 = arith.constant 0 : index
    %c0_32 = arith.constant 0 : index
    %106 = vector.load %arg4[%c0_31, %c0_32] : memref<128x64xf32, #tpu.memory_space<vmem>>, vector<128x64xf32>
    %cst_33 = arith.constant dense<0.000000e+00> : vector<16x64xf32>
    %107 = tpu.matmul %105, %106, %cst_33 {dimension_numbers = #tpu.dot_dimension_numbers<[1], [0], [0], [1], [0, 0, 1, 1], [], []>} : vector<16x128xf32>, vector<128x64xf32>, vector<16x64xf32> -> vector<16x64xf32>
    %c0_34 = arith.constant 0 : index
    %c0_35 = arith.constant 0 : index
    %108 = vector.load %arg5[%c0_34, %c0_35] : memref<1x64xf32, #tpu.memory_space<vmem>>, vector<1x64xf32>
    %109 = vector.broadcast %108 : vector<1x64xf32> to vector<16x64xf32>
    %110 = arith.addf %107, %109 : vector<16x64xf32>
    %111 = math.tanh %110 : vector<16x64xf32>
    %112 = vector.shape_cast %111 : vector<16x64xf32> to vector<2x8x64xf32>
    %cst_36 = arith.constant dense<0xFF800000> : vector<2x64xf32>
    %113 = vector.multi_reduction <maximumf>, %112, %cst_36 [1] : vector<2x8x64xf32> to vector<2x64xf32>
    %114 = tpu.iota {dimensions = array<i32: 1>} : vector<2x256xi32>
    %c0_37 = arith.constant 0 : index
    %c0_38 = arith.constant 0 : index
    %115 = vector.load %arg2[%c0_37, %c0_38] : memref<2x2xi32, #tpu.memory_space<vmem>>, vector<2x1xi32>
    %116 = vector.broadcast %115 : vector<2x1xi32> to vector<2x256xi32>
    %117 = arith.cmpi eq, %114, %116 : vector<2x256xi32>
    %c0_39 = arith.constant 0 : index
    %c1_40 = arith.constant 1 : index
    %118 = vector.load %arg2[%c0_39, %c1_40] : memref<2x2xi32, #tpu.memory_space<vmem>>, vector<2x1xi32>
    %c128_i32 = arith.constant 128 : i32
    %119 = vector.broadcast %c128_i32 : i32 to vector<2x1xi32>
    %120 = arith.addi %118, %119 : vector<2x1xi32>
    %121 = vector.broadcast %120 : vector<2x1xi32> to vector<2x256xi32>
    %122 = arith.cmpi eq, %114, %121 : vector<2x256xi32>
    %123 = arith.ori %117, %122 : vector<2x256xi1>
    %124 = arith.extui %123 : vector<2x256xi1> to vector<2x256xi32>
    %125 = arith.sitofp %124 : vector<2x256xi32> to vector<2x256xf32>
    %c0_41 = arith.constant 0 : index
    %c0_42 = arith.constant 0 : index
    %126 = vector.load %arg6[%c0_41, %c0_42] : memref<256x8xf32, #tpu.memory_space<vmem>>, vector<256x8xf32>
    %cst_43 = arith.constant dense<0.000000e+00> : vector<2x8xf32>
    %127 = tpu.matmul %125, %126, %cst_43 {dimension_numbers = #tpu.dot_dimension_numbers<[1], [0], [0], [1], [0, 0, 1, 1], [], []>} : vector<2x256xf32>, vector<256x8xf32>, vector<2x8xf32> -> vector<2x8xf32>
    %c0_44 = arith.constant 0 : index
    %c0_45 = arith.constant 0 : index
    %128 = vector.load %arg7[%c0_44, %c0_45] : memref<64x8xf32, #tpu.memory_space<vmem>>, vector<64x8xf32>
    %cst_46 = arith.constant dense<0.000000e+00> : vector<2x8xf32>
    %129 = tpu.matmul %113, %128, %cst_46 {dimension_numbers = #tpu.dot_dimension_numbers<[1], [0], [0], [1], [0, 0, 1, 1], [], []>} : vector<2x64xf32>, vector<64x8xf32>, vector<2x8xf32> -> vector<2x8xf32>
    %130 = arith.addf %127, %129 : vector<2x8xf32>
    %c0_47 = arith.constant 0 : index
    %c0_48 = arith.constant 0 : index
    %131 = vector.load %arg8[%c0_47, %c0_48] : memref<1x8xf32, #tpu.memory_space<vmem>>, vector<1x8xf32>
    %132 = vector.broadcast %131 : vector<1x8xf32> to vector<2x8xf32>
    %133 = arith.addf %130, %132 : vector<2x8xf32>
    %cst_49 = arith.constant dense<0xFF800000> : vector<2xf32>
    %134 = vector.multi_reduction <maximumf>, %133, %cst_49 [1] : vector<2x8xf32> to vector<2xf32>
    %135 = vector.shape_cast %134 : vector<2xf32> to vector<2x1xf32>
    %136 = vector.broadcast %135 : vector<2x1xf32> to vector<2x8xf32>
    %137 = arith.subf %133, %136 : vector<2x8xf32>
    %138 = math.exp %137 : vector<2x8xf32>
    %cst_50 = arith.constant dense<0.000000e+00> : vector<2xf32>
    %139 = vector.multi_reduction <add>, %138, %cst_50 [1] : vector<2x8xf32> to vector<2xf32>
    %140 = vector.shape_cast %139 : vector<2xf32> to vector<2x1xf32>
    %141 = tpu.reciprocal %140 : vector<2x1xf32> -> vector<2x1xf32>
    %142 = vector.broadcast %141 : vector<2x1xf32> to vector<2x8xf32>
    %143 = arith.mulf %138, %142 : vector<2x8xf32>
    %c0_51 = arith.constant 0 : index
    %c0_52 = arith.constant 0 : index
    %144 = vector.load %arg9[%c0_51, %c0_52] : memref<2x8xf32, #tpu.memory_space<vmem>>, vector<2x8xf32>
    tpu.vector_store %arg9[%c0_51, %c0_52], %143 {strides = array<i32>} : memref<2x8xf32, #tpu.memory_space<vmem>>, vector<2x8xf32>,
    return
  }
  func.func @transform_0(%arg0: i32) -> (i32, i32) {
    %c0_i32 = arith.constant 0 : i32
    %c0_i32_0 = arith.constant 0 : i32
    return %arg0, %c0_i32 : i32, i32
  }
  func.func @transform_1(%arg0: i32) -> (i32, i32) {
    %c0_i32 = arith.constant 0 : i32
    %c0_i32_0 = arith.constant 0 : i32
    return %arg0, %c0_i32 : i32, i32
  }
  func.func @transform_2(%arg0: i32) -> (i32, i32) {
    %c0_i32 = arith.constant 0 : i32
    %c0_i32_0 = arith.constant 0 : i32
    %c0_i32_1 = arith.constant 0 : i32
    return %c0_i32, %c0_i32_0 : i32, i32
  }
  func.func @transform_3(%arg0: i32) -> (i32, i32) {
    %c0_i32 = arith.constant 0 : i32
    %c0_i32_0 = arith.constant 0 : i32
    %c0_i32_1 = arith.constant 0 : i32
    return %c0_i32, %c0_i32_0 : i32, i32
  }
  func.func @transform_4(%arg0: i32) -> (i32, i32) {
    %c0_i32 = arith.constant 0 : i32
    %c0_i32_0 = arith.constant 0 : i32
    %c0_i32_1 = arith.constant 0 : i32
    return %c0_i32, %c0_i32_0 : i32, i32
  }
  func.func @transform_5(%arg0: i32) -> (i32, i32) {
    %c0_i32 = arith.constant 0 : i32
    %c0_i32_0 = arith.constant 0 : i32
    %c0_i32_1 = arith.constant 0 : i32
    return %c0_i32, %c0_i32_0 : i32, i32
  }
  func.func @transform_6(%arg0: i32) -> (i32, i32) {
    %c0_i32 = arith.constant 0 : i32
    %c0_i32_0 = arith.constant 0 : i32
    %c0_i32_1 = arith.constant 0 : i32
    return %c0_i32, %c0_i32_0 : i32, i32
  }
  func.func @transform_7(%arg0: i32) -> (i32, i32) {
    %c0_i32 = arith.constant 0 : i32
    %c0_i32_0 = arith.constant 0 : i32
    %c0_i32_1 = arith.constant 0 : i32
    return %c0_i32, %c0_i32_0 : i32, i32
  }
  func.func @transform_8(%arg0: i32) -> (i32, i32) {
    %c0_i32 = arith.constant 0 : i32
    %c0_i32_0 = arith.constant 0 : i32
    return %arg0, %c0_i32 : i32, i32
  }
}

</mosaic_0001>

<bundles_post_ra>
// kernel: cnn_forward.1
= control target key start
LH: loop header
LB: loop body
LE: loop exit
PB: predicated region body
PF: predicated region fallthrough
CT: control target
= control target key end

     0   :  { %v1279_v3 = vmov 0   ;;  %s1645_s0 = inlined_call_operand.vmem [shape: s32[16,3], index: 0, kind: input, shape index: {}]   ;;  %s1646_s1 = inlined_call_operand.vmem [shape: s32[2,2], index: 1, kind: input, shape index: {}]   ;;  %s1647_s2 = inlined_call_operand.vmem [shape: f32[128,24], index: 2, kind: input, shape index: {}]   ;;  %s1648_s3 = inlined_call_operand.vmem [shape: f32[128,64], index: 3, kind: input, shape index: {}]   ;;  %s1649_s4 = inlined_call_operand.vmem [shape: f32[1,64], index: 4, kind: input, shape index: {}]   ;;  %s1650_s5 = inlined_call_operand.vmem [shape: f32[256,8], index: 5, kind: input, shape index: {}]   ;;  %s1651_s6 = inlined_call_operand.vmem [shape: f32[64,8], index: 6, kind: input, shape index: {}]   ;;  %s1652_s7 = inlined_call_operand.vmem [shape: f32[1,8], index: 7, kind: input, shape index: {}]   ;;  %s1653_s8 = inlined_call_operand.hbm [shape: f32[2,8], index: 8, kind: output, shape index: {}]  }
   0x1   :  { %v31_v0 = vld [vmem:[%s1645_s0 + $0x8] sm:$0xff]  ;;  %v30_v1 = vld [vmem:[%s1645_s0] sm:$0xff]  ;;  %v85_v2 = vld [vmem:[%s1647_s2 + $0x78] sm:$0xff]  ;;  %1242 = vset.pattern.permute.xlu1 %v1279_v3  ;;  %1240 = vset.pattern.permute.xlu0 %v1279_v3 }
   0x2   :  { %42 = vperm.xlu1 %1242, %v31_v0   ;;  %39 = vperm.xlu0 %1240, %v30_v1   ;;  %v84_v4 = vld [vmem:[%s1647_s2 + $0x70] sm:$0xff]  ;;  %v33_v5 = vadd.s32 50, %v31_v0  ;;  %v32_v6 = vadd.s32 50, %v30_v1 }
   0x3   :  { %1112 = vmatprep.subr.mxu0 %v85_v2 }
   0x4   :  { %1113 = vmatpush3.msra.mxu0 %v85_v2 }
   0x5   :  { %1114 = vmatprep.subr.mxu0 %v84_v4 }
   0x6   :  { %13 = vsyncpa [#allocation3], 0  ;;  %v1280_v7 = vmov 1   ;;  %v83_v8 = vld [vmem:[%s1647_s2 + $0x68] sm:$0xff]  ;;  %v35_v9 = vadd.s32 20, %v33_v5  ;;  %v34_v10 = vadd.s32 20, %v32_v6  ;;  %1115 = vmatpush3.msra.mxu0 %v84_v4  ;;  %v36_v27 = vlaneseq }
   0x7   :  { %1243 = vset.pattern.permute.xlu1 %v1280_v7  ;;  %1241 = vset.pattern.permute.xlu0 %v1280_v7  ;;  %v82_v11 = vld [vmem:[%s1647_s2 + $0x60] sm:$0xff]  ;;  %v1281_v12 = vmov 2   ;;  %v81_v13 = vld [vmem:[%s1647_s2 + $0x58] sm:$0xff]  ;;  %v80_v14 = vld [vmem:[%s1647_s2 + $0x50] sm:$0xff]  ;;  %v1282_v33 = vmov 1.0   ;;  %v1283_v38 = vmov 0.0  }
   0x8   :  { %50 = vperm.xlu1 %1243, %v33_v5   ;;  %47 = vperm.xlu0 %1241, %v32_v6   ;;  %v79_v15 = vld [vmem:[%s1647_s2 + $0x48] sm:$0xff]  ;;  %v78_v16 = vld [vmem:[%s1647_s2 + $0x40] sm:$0xff]  ;;  %v77_v17 = vld [vmem:[%s1647_s2 + $0x38] sm:$0xff]  ;;  %v1392_v28 = vand.u32 127, %v36_v27  ;;  %v162_v34 = vshrl.u32 %v36_v27, 7  ;;  %vm206_vm13 = vcmask 130048  }
   0x9   :  { %1116 = vmatprep.subr.mxu0 %v83_v8  ;;  %v76_v18 = vld [vmem:[%s1647_s2 + $0x30] sm:$0xff]  ;;  %v75_v19 = vld [vmem:[%s1647_s2 + $0x28] sm:$0xff]  ;;  %v74_v20 = vld [vmem:[%s1647_s2 + $0x20] sm:$0xff]  ;;  %s1285_s25 = smov 24   ;;  %s1286_s0 = smov 72  }
   0xa   :  { %1117 = vmatpush3.msra.mxu0 %v83_v8  ;;  %v73_v21 = vld [vmem:[%s1647_s2 + $0x18] sm:$0xff]  ;;  %v72_v22 = vld [vmem:[%s1647_s2 + $0x10] sm:$0xff]  ;;  %v71_v23 = vld [vmem:[%s1647_s2 + $0x8] sm:$0xff]  ;;  %v168_v35 = vand.u32 7, %v162_v34  ;;  %v188_v36 = vadd.s32 4294967294, %v162_v34  ;;  %v288_v40 = vadd.s32 4294967295, %v162_v34 }
   0xb   :  { %1118 = vmatprep.subr.mxu0 %v82_v11  ;;  %v70_v24 = vld [vmem:[%s1647_s2] sm:$0xff]  ;;  %v387_v43 = vadd.s32 1, %v162_v34  ;;  %v486_v46 = vadd.s32 2, %v162_v34  ;;  %v163_v49 = vadd.s32 8, %v162_v34  ;;  %s1284_s2 = smov 48   ;;  %v647_v4 = vld [vmem:[%s1648_s3 + $0x78] sm:$0xff] }
   0xc   :  { %1244 = vset.pattern.permute.xlu1 %v1281_v12  ;;  %1245 = vset.pattern.permute.xlu0 %v1281_v12  ;;  %v192_v37 = vadd.s32 4294967294, %v168_v35  ;;  %vm190_vm10 = vcmp.eq.s32.totalorder %v1392_v28, %v188_v36  ;;  %v292_v41 = vadd.s32 4294967295, %v168_v35  ;;  %vm290_vm14 = vcmp.eq.s32.totalorder %v1392_v28, %v288_v40  ;;  %v646_v5 = vld [vmem:[%s1648_s3 + $0x70] sm:$0xff]  ;;  %v645_v6 = vld [vmem:[%s1648_s3 + $0x68] sm:$0xff]  ;;  %v644_v8 = vld [vmem:[%s1648_s3 + $0x60] sm:$0xff]  ;;  %s1287_s15 = smov 96  }
   0xd   :  { %60 = vperm.xlu0 %1245, %v35_v9   ;;  %57 = vperm.xlu1 %1244, %v34_v10   ;;  %v391_v44 = vadd.s32 1, %v168_v35  ;;  %v490_v47 = vadd.s32 2, %v168_v35  ;;  %v175_v50 = vand.u32 7, %v163_v49  ;;  %v189_v51 = vadd.s32 4294967294, %v163_v49  ;;  %v643_v9 = vld [vmem:[%s1648_s3 + $0x58] sm:$0xff]  ;;  %v642_v10 = vld [vmem:[%s1648_s3 + $0x50] sm:$0xff] }
   0xe   :  { %1119 = vmatpush3.msra.mxu0 %v82_v11  ;;  %vm194_vm11 = vcmp.ge.s32.totalorder %v192_v37, 0  ;;  %vm294_vm15 = vcmp.ge.s32.totalorder %v292_v41, 0  ;;  %v289_v53 = vadd.s32 4294967295, %v163_v49  ;;  %v388_v56 = vadd.s32 1, %v163_v49  ;;  %v641_v11 = vld [vmem:[%s1648_s3 + $0x48] sm:$0xff]  ;;  %v640_v12 = vld [vmem:[%s1648_s3 + $0x40] sm:$0xff] }
   0xf   :  { %1120 = vmatprep.subr.mxu0 %v81_v13  ;;  %vm196_vm12 = vmand %vm190_vm10, %vm194_vm11  ;;  %v193_v52 = vadd.s32 4294967294, %v175_v50  ;;  %v293_v54 = vadd.s32 4294967295, %v175_v50  ;;  %v392_v57 = vadd.s32 1, %v175_v50  ;;  %v487_v61 = vadd.s32 2, %v163_v49  ;;  %v796_v27 = vld [vmem:[%s1650_s5 + $0xf0] sm:$0xff] }
  0x10   :  { %1121 = vmatpush3.msra.mxu0 %v81_v13  ;;  %v991_v39 = vsel %vm196_vm12, 1.0, %v1283_v38  ;;  %vm291_vm10 = vcmp.eq.s32.totalorder %v1392_v28, %v289_v53  ;;  %v491_v62 = vadd.s32 2, %v175_v50  ;;  %v639_v13 = vld [vmem:[%s1648_s3 + $0x38] sm:$0xff]  ;;  %v748_v36 = vld [vmem:[%s1646_s1] sm:$0x3] }
  0x11   :  { %1246 = vset.pattern.permute.xlu0 %v1279_v3  ;;  %1122 = vmatprep.subr.mxu0 %v80_v14  ;;  %vm295_vm11 = vcmp.ge.s32.totalorder %v293_v54, 0  ;;  %v754_v37 = vadd.s32 128, %v748_v36  ;;  %v779_v54 = vld [vmem:[%s1650_s5 + $0x68] sm:$0xff] }
  0x12   :  { %1247 = vset.pattern.permute.xlu1 %v1280_v7  ;;  %1123 = vmatpush3.msra.mxu0 %v80_v14  ;;  %vm297_vm12 = vmand %vm291_vm10, %vm295_vm11  ;;  %v638_v14 = vld [vmem:[%s1648_s3 + $0x30] sm:$0xff] }
  0x13   :  { %1124 = vmatprep.subr.mxu0 %v79_v15  ;;  %1151 = vmatprep.mubr.msk.f32.mxu1 %vm206_vm13, %v991_v39  ;;  %v996_v63 = vsel %vm297_vm12, 1.0, %v1283_v38 }
  0x14   :  { %1125 = vmatpush3.msra.mxu0 %v79_v15  ;;  %v637_v15 = vld [vmem:[%s1648_s3 + $0x28] sm:$0xff] }
  0x15   :  { %1126 = vmatprep.subr.mxu0 %v78_v16 }
  0x16   :  { %1127 = vmatpush3.msra.mxu0 %v78_v16  ;;  %v636_v16 = vld [vmem:[%s1648_s3 + $0x20] sm:$0xff] }
  0x17   :  { %1128 = vmatprep.subr.mxu0 %v77_v17 }
  0x18   :  { %1129 = vmatpush3.msra.mxu0 %v77_v17  ;;  %v635_v17 = vld [vmem:[%s1648_s3 + $0x18] sm:$0xff] }
  0x19   :  { %1130 = vmatprep.subr.mxu0 %v76_v18 }
  0x1a   :  { %1131 = vmatpush3.msra.mxu0 %v76_v18  ;;  %v634_v18 = vld [vmem:[%s1648_s3 + $0x10] sm:$0xff] }
  0x1b   :  { %1132 = vmatprep.subr.mxu0 %v75_v19 }
  0x1c   :  { %1133 = vmatpush3.msra.mxu0 %v75_v19 }
  0x1d   :  { %1134 = vmatprep.subr.mxu0 %v74_v20 }
  0x1e   :  { %1135 = vmatpush3.msra.mxu0 %v74_v20  ;;  %v633_v20 = vld [vmem:[%s1648_s3 + $0x8] sm:$0xff] }
  0x1f   :  { %1136 = vmatprep.subr.mxu0 %v73_v21 }
  0x20   :  { %1137 = vmatpush3.msra.mxu0 %v73_v21 }
  0x21   :  { %1138 = vmatprep.subr.mxu0 %v72_v22 }
  0x22   :  { %1139 = vmatpush3.msra.mxu0 %v72_v22  ;;  %v632_v22 = vld [vmem:[%s1648_s3] sm:$0xff] }
  0x23   :  { %1140 = vmatprep.subr.mxu0 %v71_v23 }
  0x24   :  { %1141 = vmatpush3.msra.mxu0 %v71_v23 }
  0x25   :  { %1142 = vmatprep.subr.mxu0 %v70_v24 }
  0x26   :  { %1143 = vmatpush3.msra.mxu0 %v70_v24  ;;  %v797_v24 = vld [vmem:[%s1650_s5 + $0xf8] sm:$0xff] }
  0x27   :  { %1077 = vmatprep.subr.mxu0 %v797_v24  ;;  %v799_v24 = vld [vmem:[%s1651_s6 + $0x8] sm:$0xff] }
  0x7d   :  { %v43_v25 = vpop.permute.xlu1 %42  ;;  %v40_v26 = vpop.permute.xlu0 %39 }
  0x7e   :  { %vm45_vm2 = vcmp.eq.s32.totalorder %v1392_v28, %v43_v25  ;;  %vm44_vm3 = vcmp.eq.s32.totalorder %v1392_v28, %v40_v26  ;;  %v781_v25 = vld [vmem:[%s1650_s5 + $0x78] sm:$0xff] }
  0x83   :  { %v51_v29 = vpop.permute.xlu1 %50  ;;  %v48_v30 = vpop.permute.xlu0 %47 }
  0x84   :  { %vm53_vm0 = vcmp.eq.s32.totalorder %v1392_v28, %v51_v29  ;;  %vm52_vm1 = vcmp.eq.s32.totalorder %v1392_v28, %v48_v30  ;;  %v780_v29 = vld [vmem:[%s1650_s5 + $0x70] sm:$0xff]  ;;  %v795_v30 = vld [vmem:[%s1650_s5 + $0xe8] sm:$0xff] }
  0x85   :  { %vm55_vm4 = vmor %vm45_vm2, %vm53_vm0  ;;  %vm397_vm2 = vcmp.lt.s32.totalorder %v391_v44, 8 }
  0x86   :  { %vm54_vm7 = vmor %vm44_vm3, %vm52_vm1  ;;  %vm389_vm1 = vcmp.eq.s32.totalorder %v1392_v28, %v387_v43 }
  0x87   :  { %vm1406_vm0 = vmand %vm290_vm14, %vm294_vm15  ;;  %vm390_vm14 = vcmp.eq.s32.totalorder %v1392_v28, %v388_v56  ;;  %vm398_vm15 = vcmp.lt.s32.totalorder %v392_v57, 8  ;;  %v778_v56 = vld [vmem:[%s1650_s5 + $0x60] sm:$0xff]  ;;  %v793_v57 = vld [vmem:[%s1650_s5 + $0xd8] sm:$0xff] }
  0x88   :  { %v61_v31 = vpop.permute.xlu0 %60  ;;  %v58_v32 = vpop.permute.xlu1 %57  ;;  %vm1411_vm3 = vmand %vm389_vm1, %vm397_vm2  ;;  %v995_v60 = vsel %vm1406_vm0, 1.0, %v1283_v38  ;;  %vm489_vm1 = vcmp.eq.s32.totalorder %v1392_v28, %v487_v61  ;;  %vm497_vm2 = vcmp.lt.s32.totalorder %v491_v62, 8  ;;  %v791_v61 = vld [vmem:[%s1650_s5 + $0xc8] sm:$0xff] }
  0x89   :  { %vm63_vm5 = vcmp.eq.s32.totalorder %v1392_v28, %v61_v31  ;;  %vm62_vm6 = vcmp.eq.s32.totalorder %v1392_v28, %v58_v32  ;;  %v999_v0 = vsel %vm1411_vm3, 1.0, %v1283_v38  ;;  %vm400_vm0 = vmand %vm390_vm14, %vm398_vm15  ;;  %vm620_vm3 = vcmask 392192   ;;  %v775_v62 = vld [vmem:[%s1650_s5 + $0x48] sm:$0xff] }
  0x8a   :  { %vm65_vm8 = vmor %vm55_vm4, %vm63_vm5  ;;  %vm488_vm4 = vcmp.eq.s32.totalorder %v1392_v28, %v486_v46  ;;  %vm496_vm5 = vcmp.lt.s32.totalorder %v490_v47, 8  ;;  %v1000_v1 = vsel %vm400_vm0, 1.0, %v1283_v38  ;;  %vm732_vm0 = vcmask 523264  }
  0x8b   :  { %vm64_vm9 = vmor %vm54_vm7, %vm62_vm6  ;;  %vm191_vm7 = vcmp.eq.s32.totalorder %v1392_v28, %v189_v51 }
  0x8c   :  { %1144 = vmatprep.mubr.msk.f32.mxu0 %vm64_vm9, %v1282_v33  ;;  %vm1416_vm6 = vmand %vm488_vm4, %vm496_vm5  ;;  %vm623_vm5 = vcmask 588800  }
  0x8d   :  { %1145 = vmatmul.mubr.msk.f32.vlgmr.msra.gmra.mxu0 %vm65_vm8, %v1282_v33  ;;  %vm195_vm8 = vcmp.ge.s32.totalorder %v193_v52, 0  ;;  %v1003_v2 = vsel %vm1416_vm6, 1.0, %v1283_v38  ;;  %vm499_vm4 = vmand %vm489_vm1, %vm497_vm2  ;;  %vm626_vm6 = vcmask 785408   ;;  %vm808_vm1 = vcmask 1041409  }
  0x8e   :  { %vm197_vm9 = vmand %vm191_vm7, %vm195_vm8  ;;  %v1004_v3 = vsel %vm499_vm4, 1.0, %v1283_v38  ;;  %1078 = vmatpush3.msra.mxu0 %v781_v25  ;;  %vm629_vm7 = vcmask 982016   ;;  %vm1288_vm8 = vmmov 0   ;;  %v767_v25 = vld [vmem:[%s1650_s5 + $0x8] sm:$0xff]  ;;  %vm960_vm2 = vcmask 58368  }
  0x8f   :  { %v992_v59 = vsel %vm197_vm9, 1.0, %v1283_v38  ;;  %1079 = vmatprep.subr.mxu0 %v796_v27  ;;  %v798_v27 = vld [vmem:[%s1651_s6] sm:$0xff] }
  0x90   :  { %1080 = vmatpush3.msra.mxu0 %v780_v29  ;;  %v1007_v29 = vld [vmem:[%s1649_s4] ss:$0 sm:$0xff] }
  0x91   :  { %1081 = vmatprep.subr.mxu0 %v795_v30 }
  0x92   :  { %1082 = vmatpush3.msra.mxu0 %v779_v54  ;;  %v1015_v54 = vld [vmem:[%s1652_s7] ss:$0 sm:$0xff] }
 0x14d   :  { %v1146_v55 = vpop.f32.mrf.mxu0 }
 0x14e   :  { %597 = vrot.lane.b32.xlu1 %v1146_v55, %s1284_s2  ;;  %1147 = vmatprep.subr.mxu1 %v1146_v55 }
 0x14f   :  { %v152_v58 = vpop.f32.mrf.mxu0  ;;  %1148 = vmatpush3.msra.mxu1 %v1146_v55 }
 0x150   :  { %595 = vrot.lane.b32.xlu0 %v152_v58, %s1284_s2  ;;  %1149 = vmatprep.subr.mxu1 %v152_v58 }
 0x151   :  { %1150 = vmatpush3.msra.mxu1 %v152_v58 }
 0x152   :  { %1152 = vmatmul.mubr.msk.f32.vlgmr.msra.gmra.mxu1 %vm206_vm13, %v992_v59  ;;  %1154 = vmatprep.subr.mxu1 %v1146_v55  ;;  %v792_v59 = vld [vmem:[%s1650_s5 + $0xd0] sm:$0xff] }
 0x153   :  { %1155 = vmatpush3.msra.mxu1 %v1146_v55  ;;  %1158 = vmatprep.mubr.msk.f32.mxu1 %vm206_vm13, %v995_v60  ;;  %v776_v60 = vld [vmem:[%s1650_s5 + $0x50] sm:$0xff] }
 0x154   :  { %1156 = vmatprep.subr.mxu1 %v152_v58 }
 0x155   :  { %1157 = vmatpush3.msra.mxu1 %v152_v58 }
 0x156   :  { %1159 = vmatmul.mubr.msk.f32.vlgmr.msra.gmra.mxu1 %vm206_vm13, %v996_v63  ;;  %1161 = vmatprep.subr.mxu1 %v1146_v55  ;;  %v790_v63 = vld [vmem:[%s1650_s5 + $0xc0] sm:$0xff] }
 0x157   :  { %1162 = vmatpush3.msra.mxu1 %v1146_v55  ;;  %1165 = vmatprep.mubr.msk.f32.mxu1 %vm206_vm13, %v999_v0  ;;  %v774_v0 = vld [vmem:[%s1650_s5 + $0x40] sm:$0xff] }
 0x158   :  { %1163 = vmatprep.subr.mxu1 %v152_v58 }
 0x159   :  { %1164 = vmatpush3.msra.mxu1 %v152_v58 }
 0x15a   :  { %1166 = vmatmul.mubr.msk.f32.vlgmr.msra.gmra.mxu1 %vm206_vm13, %v1000_v1  ;;  %1168 = vmatprep.subr.mxu1 %v1146_v55  ;;  %v789_v1 = vld [vmem:[%s1650_s5 + $0xb8] sm:$0xff] }
 0x15b   :  { %1169 = vmatpush3.msra.mxu1 %v1146_v55  ;;  %1172 = vmatprep.mubr.msk.f32.mxu1 %vm206_vm13, %v1003_v2  ;;  %v794_v55 = vld [vmem:[%s1650_s5 + $0xe0] sm:$0xff]  ;;  %v773_v2 = vld [vmem:[%s1650_s5 + $0x38] sm:$0xff] }
 0x15c   :  { %1170 = vmatprep.subr.mxu1 %v152_v58  ;;  %1083 = vmatprep.subr.mxu0 %v794_v55 }
 0x15d   :  { %1171 = vmatpush3.msra.mxu1 %v152_v58  ;;  %1084 = vmatpush3.msra.mxu0 %v778_v56  ;;  %v777_v58 = vld [vmem:[%s1650_s5 + $0x58] sm:$0xff] }
 0x15e   :  { %1173 = vmatmul.mubr.msk.f32.vlgmr.msra.gmra.mxu1 %vm206_vm13, %v1004_v3  ;;  %1175 = vmatprep.subr.mxu1 %v647_v4  ;;  %vm617_vm13 = vcmask 195584   ;;  %v805_v3 = vld [vmem:[%s1651_s6 + $0x38] sm:$0xff] }
 0x15f   :  { %1176 = vmatpush3.msra.mxu1 %v647_v4  ;;  %1085 = vmatprep.subr.mxu0 %v793_v57  ;;  %v747_v4 = vadd.s32 128, %v1392_v28 }
 0x160   :  { %1177 = vmatprep.subr.mxu1 %v646_v5  ;;  %1086 = vmatpush3.msra.mxu0 %v777_v58 }
 0x161   :  { %1178 = vmatpush3.msra.mxu1 %v646_v5  ;;  %1087 = vmatprep.subr.mxu0 %v792_v59  ;;  %v788_v5 = vld [vmem:[%s1650_s5 + $0xb0] sm:$0xff] }
 0x162   :  { %1179 = vmatprep.subr.mxu1 %v645_v6  ;;  %1088 = vmatpush3.msra.mxu0 %v776_v60 }
 0x163   :  { %1180 = vmatpush3.msra.mxu1 %v645_v6  ;;  %1089 = vmatprep.subr.mxu0 %v791_v61  ;;  %v804_v6 = vld [vmem:[%s1651_s6 + $0x30] sm:$0xff] }
 0x164   :  { %1181 = vmatprep.subr.mxu1 %v644_v8  ;;  %1090 = vmatpush3.msra.mxu0 %v775_v62 }
 0x165   :  { %1182 = vmatpush3.msra.mxu1 %v644_v8  ;;  %1091 = vmatprep.subr.mxu0 %v790_v63 }
 0x166   :  { %1183 = vmatprep.subr.mxu1 %v643_v9  ;;  %1092 = vmatpush3.msra.mxu0 %v774_v0 }
 0x167   :  { %1184 = vmatpush3.msra.mxu1 %v643_v9  ;;  %1093 = vmatprep.subr.mxu0 %v789_v1 }
 0x168   :  { %1185 = vmatprep.subr.mxu1 %v642_v10  ;;  %1094 = vmatpush3.msra.mxu0 %v773_v2 }
 0x169   :  { %1186 = vmatpush3.msra.mxu1 %v642_v10  ;;  %v772_v10 = vld [vmem:[%s1650_s5 + $0x30] sm:$0xff]  ;;  %1095 = vmatprep.subr.mxu0 %v788_v5 }
 0x16a   :  { %1187 = vmatprep.subr.mxu1 %v641_v11  ;;  %1096 = vmatpush3.msra.mxu0 %v772_v10 }
 0x16b   :  { %1188 = vmatpush3.msra.mxu1 %v641_v11  ;;  %v803_v11 = vld [vmem:[%s1651_s6 + $0x28] sm:$0xff] }
 0x16c   :  { %1189 = vmatprep.subr.mxu1 %v640_v12 }
 0x16d   :  { %1190 = vmatpush3.msra.mxu1 %v640_v12  ;;  %v787_v12 = vld [vmem:[%s1650_s5 + $0xa8] sm:$0xff] }
 0x16e   :  { %1191 = vmatprep.subr.mxu1 %v639_v13  ;;  %1097 = vmatprep.subr.mxu0 %v787_v12 }
 0x16f   :  { %1192 = vmatpush3.msra.mxu1 %v639_v13  ;;  %v771_v13 = vld [vmem:[%s1650_s5 + $0x28] sm:$0xff] }
 0x170   :  { %1193 = vmatprep.subr.mxu1 %v638_v14  ;;  %1098 = vmatpush3.msra.mxu0 %v771_v13 }
 0x171   :  { %1194 = vmatpush3.msra.mxu1 %v638_v14  ;;  %v802_v14 = vld [vmem:[%s1651_s6 + $0x20] sm:$0xff] }
 0x172   :  { %1195 = vmatprep.subr.mxu1 %v637_v15 }
 0x173   :  { %1196 = vmatpush3.msra.mxu1 %v637_v15  ;;  %v786_v15 = vld [vmem:[%s1650_s5 + $0xa0] sm:$0xff] }
 0x174   :  { %1197 = vmatprep.subr.mxu1 %v636_v16  ;;  %1099 = vmatprep.subr.mxu0 %v786_v15 }
 0x175   :  { %1198 = vmatpush3.msra.mxu1 %v636_v16  ;;  %v770_v16 = vld [vmem:[%s1650_s5 + $0x20] sm:$0xff] }
 0x176   :  { %1199 = vmatprep.subr.mxu1 %v635_v17  ;;  %1100 = vmatpush3.msra.mxu0 %v770_v16 }
 0x177   :  { %1200 = vmatpush3.msra.mxu1 %v635_v17  ;;  %v801_v17 = vld [vmem:[%s1651_s6 + $0x18] sm:$0xff] }
 0x178   :  { %1201 = vmatprep.subr.mxu1 %v634_v18 }
 0x179   :  { %1202 = vmatpush3.msra.mxu1 %v634_v18  ;;  %v785_v18 = vld [vmem:[%s1650_s5 + $0x98] sm:$0xff] }
 0x17a   :  { %1203 = vmatprep.subr.mxu1 %v633_v20  ;;  %1101 = vmatprep.subr.mxu0 %v785_v18 }
 0x17b   :  { %1204 = vmatpush3.msra.mxu1 %v633_v20  ;;  %v784_v20 = vld [vmem:[%s1650_s5 + $0x90] sm:$0xff] }
 0x17c   :  { %1205 = vmatprep.subr.mxu1 %v632_v22 }
 0x17d   :  { %1206 = vmatpush3.msra.mxu1 %v632_v22  ;;  %v768_v22 = vld [vmem:[%s1650_s5 + $0x10] sm:$0xff] }
 0x17e   :  { %1210 = vmatprep.subr.mxu1 %v1283_v38 }
 0x1c0   :  { %v598_v39 = vpop.permute.xlu1 %597 }
 0x1c2   :  { %v596_v41 = vpop.permute.xlu0 %595 }
 0x212   :  { %v1153_v19 = vpop.f32.mrf.mxu1 }
 0x214   :  { %v279_v21 = vpop.f32.mrf.mxu1 }
 0x216   :  { %v1160_v23 = vpop.f32.mrf.mxu1 }
 0x217   :  { %589 = vrot.lane.b32.xlu1 %v1160_v23, %s1285_s25  ;;  %v783_v23 = vld [vmem:[%s1650_s5 + $0x88] sm:$0xff] }
 0x218   :  { %v378_v26 = vpop.f32.mrf.mxu1 }
 0x21a   :  { %v1167_v31 = vpop.f32.mrf.mxu1 }
 0x21b   :  { %587 = vrot.lane.b32.xlu1 %v378_v26, %s1285_s25  ;;  %v782_v26 = vld [vmem:[%s1650_s5 + $0x80] sm:$0xff] }
 0x21c   :  { %v477_v32 = vpop.f32.mrf.mxu1 }
 0x21d   :  { %603 = vrot.lane.b32.xlu0 %v477_v32, %s1286_s0 }
 0x21e   :  { %v1174_v34 = vpop.f32.mrf.mxu1 }
 0x21f   :  { %605 = vrot.lane.b32.xlu1 %v1167_v31, %s1286_s0 }
 0x220   :  { %v576_v35 = vpop.f32.mrf.mxu1 }
 0x221   :  { %611 = vrot.lane.b32.xlu0 %v576_v35, %s1287_s15 }
 0x223   :  { %613 = vrot.lane.b32.xlu1 %v1174_v34, %s1287_s15 }
 0x225   :  { %750 = vperm.xlu0 %1246, %v748_v36  }
 0x227   :  { %756 = vperm.xlu1 %1247, %v754_v37  }
 0x229   :  { %1248 = vset.pattern.permute.xlu0 %v1280_v7 }
 0x289   :  { %v590_v40 = vpop.permute.xlu1 %589 }
 0x28a   :  { %v619_v46 = vsel %vm617_vm13, %v1153_v19, %v590_v40  ;;  %v769_v19 = vld [vmem:[%s1650_s5 + $0x18] sm:$0xff] }
 0x28b   :  { %v622_v50 = vsel %vm620_vm3, %v619_v46, %v598_v39  ;;  %1102 = vmatpush3.msra.mxu0 %v769_v19 }
 0x28c   :  { %1103 = vmatprep.subr.mxu0 %v784_v20 }
 0x28d   :  { %v588_v42 = vpop.permute.xlu1 %587  ;;  %1104 = vmatpush3.msra.mxu0 %v768_v22 }
 0x28e   :  { %v618_v43 = vsel %vm617_vm13, %v279_v21, %v588_v42  ;;  %v800_v21 = vld [vmem:[%s1651_s6 + $0x10] sm:$0xff]  ;;  %1105 = vmatprep.subr.mxu0 %v783_v23  ;;  %s1289_s6 = smov [#allocation2]  }
 0x28f   :  { %v604_v44 = vpop.permute.xlu0 %603  ;;  %v621_v45 = vsel %vm620_vm3, %v618_v43, %v596_v41  ;;  %1106 = vmatpush3.msra.mxu0 %v767_v25  ;;  %s979_s11 = sshll.u32 %s1289_s6, 4  ;;  %s980_s11 = int_to_ptr.vmem [resolvable:$true] %s979_s11 }
 0x290   :  { %v624_v48 = vsel %vm623_vm5, %v621_v45, %v604_v44  ;;  %1107 = vmatprep.subr.mxu0 %v782_v26  ;;  %s1257_s7 = scalar_lea.vmem %s980_s11, 32  ;;  %p1262_p1 = scmp.lt.s32.totalorder %s980_s11, %s980_s11 }
 0x291   :  { %v606_v47 = vpop.permute.xlu1 %605  ;;  %p1258_p0 = scmp.ne.s32.totalorder %s980_s11, %s1257_s7  ;;  %p1263_p2 = scmp.lt.s32.totalorder %s1257_s7, %s1257_s7 }
 0x292   :  { %v625_v52 = vsel %vm623_vm5, %v622_v50, %v606_v47 }
 0x293   :  { %v612_v49 = vpop.permute.xlu0 %611  ;;  %p1264_p3 = por %p1263_p2, %p1262_p1 }
 0x294   :  { %v627_v51 = vsel %vm626_vm6, %v624_v48, %v612_v49 }
 0x295   :  { %v614_v7 = vpop.permute.xlu1 %613  ;;  %1207 = vmatprep.mubr.msk.f32.mxu1 %vm629_vm7, %v627_v51  ;;  %p1265_p4 = pnand %p1264_p3, %p1258_p0 }
 0x296   :  { %v628_v53 = vsel %vm626_vm6, %v625_v52, %v614_v7 }
 0x297   :  { %1208 = vmatmul.mubr.msk.f32.vlgmr.msra.gmra.mxu1 %vm629_vm7, %v628_v53 }
 0x298   :  { %1226 = vmatprep.mubr.msk.f32.mxu1 %vm1288_vm8, %v1283_v38  ;;  %1211 = vmatpush3.msra.mxu1 %v805_v3 }
 0x299   :  { %1212 = vmatprep.subr.mxu1 %v1283_v38 }
 0x29a   :  { %1213 = vmatpush3.msra.mxu1 %v804_v6 }
 0x29b   :  { %1214 = vmatprep.subr.mxu1 %v1283_v38 }
 0x29c   :  { %1215 = vmatpush3.msra.mxu1 %v803_v11 }
 0x29d   :  { %1216 = vmatprep.subr.mxu1 %v1283_v38 }
 0x29e   :  { %1217 = vmatpush3.msra.mxu1 %v802_v14 }
 0x29f   :  { %1218 = vmatprep.subr.mxu1 %v1283_v38 }
 0x2a0   :  { %v751_v9 = vpop.permute.xlu0 %750  ;;  %1219 = vmatpush3.msra.mxu1 %v801_v17 }
 0x2a1   :  { %vm753_vm10 = vcmp.eq.s32.totalorder %v747_v4, %v751_v9  ;;  %1220 = vmatprep.subr.mxu1 %v1283_v38  ;;  %vm752_vm14 = vcmp.eq.s32.totalorder %v1392_v28, %v751_v9 }
 0x2a2   :  { %v757_v8 = vpop.permute.xlu1 %756  ;;  %1221 = vmatpush3.msra.mxu1 %v800_v21 }
 0x2a3   :  { %vm759_vm9 = vcmp.eq.s32.totalorder %v747_v4, %v757_v8  ;;  %vm758_vm12 = vcmp.eq.s32.totalorder %v1392_v28, %v757_v8  ;;  %1222 = vmatprep.subr.mxu1 %v1283_v38  ;;  %v766_v28 = vld [vmem:[%s1650_s5] sm:$0xff] }
 0x2a4   :  { %vm761_vm11 = vmor %vm753_vm10, %vm759_vm9  ;;  %1223 = vmatpush3.msra.mxu1 %v799_v24  ;;  %1108 = vmatpush3.msra.mxu0 %v766_v28 }
 0x2a5   :  { %1013 = vmatprep.mubr.msk.f32.mxu0 %vm761_vm11, %v1282_v33  ;;  %vm760_vm15 = vmor %vm752_vm14, %vm758_vm12  ;;  %1224 = vmatprep.subr.mxu1 %v1283_v38 }
 0x2a6   :  { %1225 = vmatpush3.msra.mxu1 %v798_v27  ;;  %1014 = vmatmul.mubr.msk.f32.vlgmr.msra.gmra.mxu0 %vm760_vm15, %v1282_v33 }
 0x357   :  { %v1209_v30 = vpop.f32.mrf.mxu1 }
 0x358   :  { %v727_v31 = vadd.f32 %v1209_v30, %v1007_v29 }
 0x359   :  { %v721_v32 = vpop.f32.mrf.mxu1 }
 0x35a   :  { %1249 = vtanh.f32 %v727_v31  ;;  %v722_v34 = vadd.f32 %v1007_v29, %v721_v32 }
 0x35c   :  { %1251 = vtanh.f32 %v722_v34 }
 0x366   :  { %v1109_v51 = vpop.f32.mrf.mxu0 }
 0x367   :  { %v1250_v35 = vpop.eup %1249 }
 0x368   :  { %v740_v36 = vsel %vm732_vm0, %v1250_v35, -inf  ;;  %v1110_v52 = vpop.f32.mrf.mxu0 }
 0x369   :  { %v1252_v38 = vpop.eup %1251  ;;  %v741_v37 = vrot.slane %v740_v36, 4  ;;  %v1111_v7 = vadd.f32 %v1110_v52, %v1109_v51 }
 0x36a   :  { %v733_v39 = vsel %vm732_vm0, %v1252_v38, -inf }
 0x36b   :  { %v734_v40 = vrot.slane %v733_v39, 4  ;;  %v742_v33 = vmax.f32 %v740_v36, %v741_v37 }
 0x36d   :  { %v735_v41 = vmax.f32 %v733_v39, %v734_v40  ;;  %v743_v42 = vrot.slane %v742_v33, 2 }
 0x36f   :  { %v736_v43 = vrot.slane %v735_v41, 2  ;;  %v744_v44 = vmax.f32 %v742_v33, %v743_v42 }
 0x371   :  { %v737_v45 = vmax.f32 %v735_v41, %v736_v43  ;;  %v745_v46 = vrot.slane %v744_v44, 1 }
 0x373   :  { %v738_v47 = vrot.slane %v737_v45, 1  ;;  %v746_v49 = vmax.f32 %v744_v44, %v745_v46 }
 0x375   :  { %v739_v48 = vmax.f32 %v737_v45, %v738_v47 }
 0x377   :  { %v809_v50 = vsel %vm808_vm1, %v746_v49, %v739_v48 }
 0x378   :  { %1227 = vmatmul.mubr.msk.f32.vlgmr.msra.gmra.mxu1 %vm732_vm0, %v809_v50 }
 0x438   :  { %v878_v53 = vpop.f32.mrf.mxu1 }
 0x439   :  { %v949_v55 = vadd.f32 %v1111_v7, %v878_v53 }
 0x43a   :  { %v1228_v56 = vpop.f32.mrf.mxu1 }
 0x43b   :  { %v959_v57 = vadd.f32 %v1015_v54, %v949_v55 }
 0x43d   :  { %v961_v58 = vsel %vm960_vm2, %v959_v57, -inf }
 0x43e   :  { %962 = vmax.xlane.f32.xlu1 %v961_v58 }
 0x4c7   :  { %v963_v59 = vpop.xlane.xlu1 %962 }
 0x4c8   :  { %v964_v60 = vsub.f32 %v959_v57, %v963_v59 }
 0x4ca   :  { %v965_v61 = vmul.f32 1.442695, %v964_v60 }
 0x4cc   :  { %1253 = vpow2.f32 %v965_v61 }
 0x4d9   :  { %v1254_v62 = vpop.eup %1253 }
 0x4da   :  { %v967_v63 = vsel %vm960_vm2, %v1254_v62, 0.0 }
 0x4db   :  { %968 = vadd.xlane.f32.xlu0 %v967_v63 }
 0x564   :  { %v969_v0 = vpop.xlane.xlu0 %968 }
 0x565   :  { %1255 = vrcp.f32 %v969_v0 }
 0x572   :  { %v1256_v1 = vpop.eup %1255 }
 0x573   :  { %v971_v2 = vmul.f32 %v1256_v1, %v1254_v62 }
 0x575   :  { %972 = vst.msk [vmem:[#allocation2] sm:$0x3] %vm960_vm2, %v971_v2 }
 0x576   :  { %1268 = shalt.err (!%p1265_p4)
}
 0x577   :  { %982 = dma.vmem_to_hbm [thread:$0]  %s980_s11, 32, %s1653_s8, [#allocation3]  }
 0x578   :  { %1277 = dma.done.wait [#allocation3], 32  }
 0x579   :  { %1278 = vsyncadd [#allocation3], 4294967264 }
 0x57a   :  { %986 = vsyncpa [#allocation3], 1 }

</bundles_post_ra>
